<compile_context>
chip_gen: v7x
topology: tpu7x:2x2x1
jax: 0.10.0
libtpu: 0.0.40
codegen_flags: <defaults>
</compile_context>

<pallas_src>
import functools

import jax
import jax.numpy as jnp
from jax.experimental import pallas as pl
from jax.experimental.pallas import tpu as pltpu

BN_EPS = 1e-5


def _pick_block_batch(B, target=8):
    """Largest divisor of B that is <= target while keeping >= 2 grid steps."""
    best = 1
    for d in range(1, min(B, target) + 1):
        if B % d == 0 and (B // d >= 2 or B == 1):
            best = d
    return best


def _gconv_matmul_kernel(w_ref, xw_ref, bias_ref, y_ref, stats_ref, *,
                         relu_cols):
    """Fused gmul + fc1/fc2 + partial BatchNorm statistics for one batch block.

    w_ref:     (BB, N, N*J)   f32  graph operators, native (n-major, j-minor)
    xw_ref:    (BB, N*J, Cp)  f32  precomputed x @ wr, same (n, j) ordering
    bias_ref:  (1, Cp)        f32  fused fc bias (zero padded), resident
    y_ref:     (BB, N, Cp)    f32  pre-BN activations (output, lane dense)
    stats_ref: (1, 2, Cp)     f32  per-step [sum, sumsq] over BB*N rows (output)
    """
    bb, n, _ = w_ref.shape
    cp = y_ref.shape[-1]
    bias = bias_ref[...]                                       # (1, Cp)
    # Hoisted out of the batch loop (JAX does not CSE broadcast_in_dim):
    # column mask selecting the fc1 (ReLU) half.
    relu_mask = jax.lax.broadcasted_iota(jnp.int32, (n, cp), 1) < relu_cols

    ssum = jnp.zeros((1, cp), jnp.float32)
    ssq = jnp.zeros((1, cp), jnp.float32)
    for b in range(bb):                                        # BB is static
        # Single reassociated contraction over the merged (n, j) axis:
        #   y[m, c] = sum_{n,j} W[m, n, j] * (x[n, :] @ wr[j, :, c])
        y = jnp.dot(w_ref[b], xw_ref[b],
                    preferred_element_type=jnp.float32) + bias  # (N, Cp)
        y = jnp.where(relu_mask, jnp.maximum(y, 0.0), y)
        y_ref[b] = y
        ssum = ssum + jnp.sum(y, axis=0, keepdims=True)
        ssq = ssq + jnp.sum(y * y, axis=0, keepdims=True)
    stats_ref[0, 0:1, :] = ssum
    stats_ref[0, 1:2, :] = ssq


def _bn_apply_kernel(ss_ref, y_ref, out_ref):
    """Streamed FMA: out = y * scale + shift (scale/shift precomputed).

    ss_ref:  (2, Cp)      f32  packed [scale; shift], resident
    y_ref:   (BB, N, Cp)  f32  pre-BN activations (HBM buffer aliased with out)
    out_ref: (BB, N, Cp)  f32
    """
    out_ref[...] = y_ref[...] * ss_ref[0:1, :] + ss_ref[1:2, :]


@jax.jit
def gconv_forward(W, x, params):
    """Pallas implementation of Gconv.forward.  Returns (W, out)."""
    B, N, _, J = W.shape
    F_in = x.shape[-1]
    w1t, b1, w2t, b2, gamma, beta = params
    half = w1t.shape[-1]
    C = 2 * half                                    # num_outputs
    Cp = ((C + 127) // 128) * 128                   # lane-dense channel count
    pad = Cp - C

    # ---- pack + zero-pad the small parameters (padded columns stay exactly
    #      zero through fc, ReLU and BN, so they can be sliced off at the end).
    wr = jnp.concatenate([w1t, w2t], axis=1).reshape(J, F_in, C)
    wr = jnp.pad(wr, ((0, 0), (0, 0), (0, pad)))                 # (J, F, Cp)
    bias = jnp.pad(jnp.concatenate([b1, b2], axis=1),
                   ((0, 0), (0, pad)))                           # (1, Cp)
    gamma_p = jnp.pad(gamma, ((0, 0), (0, pad)))                 # (1, Cp)
    beta_p = jnp.pad(beta, ((0, 0), (0, pad)))                   # (1, Cp)

    # ---- W stays in its native layout; only a free metadata reshape.
    W_flat = W.reshape(B, N, N * J)                              # f32, no copy

    # ---- hoisted tiny first-stage matmul (K = F_in fills <2% of the MXU):
    #      done once over all B*N rows in plain JAX.  (n-major, j-minor)
    #      ordering matches the flattened last axis of W_flat.
    XW = jnp.einsum("bnf,jfc->bnjc", x, wr).reshape(B, N * J, Cp)

    BB = _pick_block_batch(B)
    S = B // BB

    cost = pl.CostEstimate(
        flops=2 * B * N * (N * J) * Cp,
        transcendentals=0,
        bytes_accessed=(W_flat.size + XW.size + bias.size
                        + B * N * Cp + S * 2 * Cp) * 4,
    )

    # Phase 1: streamed per-batch-block matmuls + pre-BN activations + BN
    # partial statistics.  All stores are unmasked lane-dense (Cp % 128 == 0).
    y_pre, stats = pl.pallas_call(
        functools.partial(_gconv_matmul_kernel, relu_cols=half),
        grid=(S,),
        in_specs=[
            pl.BlockSpec((BB, N, N * J), lambda s: (s, 0, 0)),
            pl.BlockSpec((BB, N * J, Cp), lambda s: (s, 0, 0)),
            pl.BlockSpec((1, Cp), lambda s: (0, 0)),
        ],
        out_specs=(
            pl.BlockSpec((BB, N, Cp), lambda s: (s, 0, 0)),
            pl.BlockSpec((1, 2, Cp), lambda s: (s, 0, 0)),
        ),
        out_shape=(
            jax.ShapeDtypeStruct((B, N, Cp), jnp.float32),
            jax.ShapeDtypeStruct((S, 2, Cp), jnp.float32),
        ),
        compiler_params=pltpu.CompilerParams(
            dimension_semantics=("parallel",),
            vmem_limit_bytes=48 * 1024 * 1024,
        ),
        cost_estimate=cost,
    )(W_flat, XW, bias)

    # Tiny O(C) reduction + scale/shift derivation, hoisted out of the
    # per-step kernel body (plain JAX, runs once).
    count = float(B * N)
    tot = jnp.sum(stats, axis=0)                      # (2, Cp)
    mean = tot[0] / count
    var = jnp.maximum(tot[1] / count - mean * mean, 0.0)   # biased variance
    scale = gamma_p[0] * jax.lax.rsqrt(var + BN_EPS)
    shift = beta_p[0] - mean * scale
    scale_shift = jnp.stack([scale, shift], axis=0)   # (2, Cp)

    # Phase 2: pure streamed normalize+affine FMA; output aliases y_pre's HBM
    # buffer so no extra B*N*Cp allocation or copy.
    out_p = pl.pallas_call(
        _bn_apply_kernel,
        grid=(S,),
        in_specs=[
            pl.BlockSpec((2, Cp), lambda s: (0, 0)),
            pl.BlockSpec((BB, N, Cp), lambda s: (s, 0, 0)),
        ],
        out_specs=pl.BlockSpec((BB, N, Cp), lambda s: (s, 0, 0)),
        out_shape=jax.ShapeDtypeStruct((B, N, Cp), jnp.float32),
        input_output_aliases={1: 0},
        compiler_params=pltpu.CompilerParams(
            dimension_semantics=("parallel",),
        ),
    )(scale_shift, y_pre)

    # Drop the zero lane padding (no-op when C is already a multiple of 128).
    out = out_p[:, :, :C]
    # TODO(synk): BatchNorm1d running_mean/running_var momentum buffers are
    # not updated/returned (pure forward benchmark only).
    return W, out


def gconv_reference(W, x, params):
    """Pure-JAX (f32) reference mirroring the PyTorch forward, for validation."""
    B, N, _, J = W.shape
    w1t, b1, w2t, b2, gamma, beta = params
    parts = [jnp.einsum("bmn,bnf->bmf", W[:, :, :, j], x) for j in range(J)]
    gm = jnp.concatenate(parts, axis=-1)                    # (B, N, J*F)
    flat = gm.reshape(-1, gm.shape[-1])                     # (B*N, J*F)
    y1 = jax.nn.relu(flat @ w1t + b1[0])
    y2 = flat @ w2t + b2[0]
    y = jnp.concatenate([y1, y2], axis=-1)
    mean = jnp.mean(y, axis=0, keepdims=True)
    var = jnp.mean((y - mean) ** 2, axis=0, keepdims=True)  # biased
    y = (y - mean) / jnp.sqrt(var + BN_EPS) * gamma[0] + beta[0]
    return W, y.reshape(B, N, -1)


def make_params(key, feature_maps, J):
    """Deterministic synthetic parameters matching Gconv.__init__ shapes."""
    num_inputs = J * feature_maps[0]
    num_outputs = feature_maps[1]
    half = num_outputs // 2
    k1, k2, k3, k4 = jax.random.split(key, 4)
    # nn.Linear weights are (out, in); we pre-transpose to (in, out).
    w1t = jax.random.normal(k1, (num_inputs, half), jnp.float32) * 0.1
    b1 = jax.random.normal(k2, (1, half), jnp.float32) * 0.01
    w2t = jax.random.normal(k3, (num_inputs, half), jnp.float32) * 0.1
    b2 = jax.random.normal(k4, (1, half), jnp.float32) * 0.01
    gamma = jnp.ones((1, num_outputs), jnp.float32)   # BatchNorm1d defaults
    beta = jnp.zeros((1, num_outputs), jnp.float32)
    return w1t, b1, w2t, b2, gamma, beta


if __name__ == "__main__":
    # Small shapes consistent with the module: feature_maps = [4, 32], J = 2.
    B, N, J, F_in = 2, 16, 2, 4
    feature_maps = [F_in, 32]

    key = jax.random.PRNGKey(0)
    kW, kx, kp = jax.random.split(key, 3)
    W = jax.random.normal(kW, (B, N, N, J), jnp.float32)
    x = jax.random.normal(kx, (B, N, F_in), jnp.float32)
    params = make_params(kp, feature_maps, J)

    W_out, y = gconv_forward(W, x, params)
    y = jax.block_until_ready(y)

    # Validate against the pure-JAX f32 reference.  All kernel matmul operands
    # are kept in f32 now (W is read natively), so the tolerance is tighter
    # than the previous bf16 version.
    _, y_ref = gconv_reference(W, x, params)
    assert y.shape == (B, N, feature_maps[1])
    assert jnp.allclose(y, y_ref, atol=2e-2, rtol=2e-2), (
        float(jnp.max(jnp.abs(y - y_ref))))

    print("KERNEL_OK")
</pallas_src>

<mosaic_0001>
module attributes {stable_mosaic.version = 11 : i64} {
  func.func @_gconv_matmul_kernel(%arg0: i32, %arg1: memref<1x16x32xf32, #tpu.memory_space<vmem>>, %arg2: memref<1x32x128xf32, #tpu.memory_space<vmem>>, %arg3: memref<1x128xf32, #tpu.memory_space<vmem>>, %arg4: memref<1x16x128xf32, #tpu.memory_space<vmem>>, %arg5: memref<1x2x128xf32, #tpu.memory_space<vmem>>) attributes {dimension_semantics = [#tpu.dimension_semantics<parallel>], iteration_bounds = array<i64: 2>, scalar_prefetch = 0 : i64, scratch_operands = 0 : i64, tpu.core_type = #tpu.core_type<tc>, window_params = [{transform_indices = @transform_0, window_bounds = array<i64: 1, 16, 32>}, {transform_indices = @transform_1, window_bounds = array<i64: 1, 32, 128>}, {pipeline_mode = #tpu.pipeline_mode<synchronous>, transform_indices = @transform_2, window_bounds = array<i64: 1, 128>}, {transform_indices = @transform_3, window_bounds = array<i64: 1, 16, 128>}, {transform_indices = @transform_4, window_bounds = array<i64: 1, 2, 128>}]} {
    %c0 = arith.constant 0 : index
    %c0_0 = arith.constant 0 : index
    %0 = vector.load %arg3[%c0, %c0_0] : memref<1x128xf32, #tpu.memory_space<vmem>>, vector<1x128xf32>
    %1 = tpu.iota {dimensions = array<i32: 1>} : vector<16x128xi32>
    %c16_i32 = arith.constant 16 : i32
    %2 = vector.broadcast %c16_i32 : i32 to vector<16x128xi32>
    %3 = arith.cmpi slt, %1, %2 : vector<16x128xi32>
    %cst = arith.constant 0.000000e+00 : f32
    %4 = vector.broadcast %cst : f32 to vector<1x128xf32>
    %cst_1 = arith.constant 0.000000e+00 : f32
    %5 = vector.broadcast %cst_1 : f32 to vector<1x128xf32>
    %c0_2 = arith.constant 0 : index
    %c0_3 = arith.constant 0 : index
    %c0_4 = arith.constant 0 : index
    %6 = vector.load %arg1[%c0_2, %c0_3, %c0_4] : memref<1x16x32xf32, #tpu.memory_space<vmem>>, vector<1x16x32xf32>
    %7 = vector.shape_cast %6 : vector<1x16x32xf32> to vector<16x32xf32>
    %c0_5 = arith.constant 0 : index
    %c0_6 = arith.constant 0 : index
    %c0_7 = arith.constant 0 : index
    %8 = vector.load %arg2[%c0_5, %c0_6, %c0_7] : memref<1x32x128xf32, #tpu.memory_space<vmem>>, vector<1x32x128xf32>
    %9 = vector.shape_cast %8 : vector<1x32x128xf32> to vector<32x128xf32>
    %cst_8 = arith.constant dense<0.000000e+00> : vector<16x128xf32>
    %10 = tpu.matmul %7, %9, %cst_8 {dimension_numbers = #tpu.dot_dimension_numbers<[1], [0], [0], [1], [0, 0, 1, 1], [], []>} : vector<16x32xf32>, vector<32x128xf32>, vector<16x128xf32> -> vector<16x128xf32>
    %11 = vector.broadcast %0 : vector<1x128xf32> to vector<16x128xf32>
    %12 = arith.addf %10, %11 : vector<16x128xf32>
    %cst_9 = arith.constant 0.000000e+00 : f32
    %13 = vector.broadcast %cst_9 : f32 to vector<16x128xf32>
    %14 = arith.maximumf %12, %13 : vector<16x128xf32>
    %15 = arith.select %3, %14, %12 : vector<16x128xi1>, vector<16x128xf32>
    %c0_10 = arith.constant 0 : index
    %c0_11 = arith.constant 0 : index
    %c0_12 = arith.constant 0 : index
    %16 = vector.load %arg4[%c0_10, %c0_11, %c0_12] : memref<1x16x128xf32, #tpu.memory_space<vmem>>, vector<1x16x128xf32>
    %17 = vector.shape_cast %16 : vector<1x16x128xf32> to vector<16x128xf32>
    %18 = vector.shape_cast %15 : vector<16x128xf32> to vector<1x16x128xf32>
    tpu.vector_store %arg4[%c0_10, %c0_11, %c0_12], %18 {strides = array<i32>} : memref<1x16x128xf32, #tpu.memory_space<vmem>>, vector<1x16x128xf32>,
    %cst_13 = arith.constant dense<0.000000e+00> : vector<128xf32>
    %19 = vector.multi_reduction <add>, %15, %cst_13 [0] : vector<16x128xf32> to vector<128xf32>
    %20 = vector.shape_cast %19 : vector<128xf32> to vector<1x128xf32>
    %21 = arith.addf %4, %20 : vector<1x128xf32>
    %22 = arith.mulf %15, %15 : vector<16x128xf32>
    %cst_14 = arith.constant dense<0.000000e+00> : vector<128xf32>
    %23 = vector.multi_reduction <add>, %22, %cst_14 [0] : vector<16x128xf32> to vector<128xf32>
    %24 = vector.shape_cast %23 : vector<128xf32> to vector<1x128xf32>
    %25 = arith.addf %5, %24 : vector<1x128xf32>
    %c0_15 = arith.constant 0 : index
    %c0_16 = arith.constant 0 : index
    %c0_17 = arith.constant 0 : index
    %26 = vector.load %arg5[%c0_15, %c0_16, %c0_17] : memref<1x2x128xf32, #tpu.memory_space<vmem>>, vector<1x1x128xf32>
    %27 = vector.shape_cast %26 : vector<1x1x128xf32> to vector<1x128xf32>
    %28 = vector.shape_cast %21 : vector<1x128xf32> to vector<1x1x128xf32>
    tpu.vector_store %arg5[%c0_15, %c0_16, %c0_17], %28 {strides = array<i32>} : memref<1x2x128xf32, #tpu.memory_space<vmem>>, vector<1x1x128xf32>,
    %c0_18 = arith.constant 0 : index
    %c1 = arith.constant 1 : index
    %c0_19 = arith.constant 0 : index
    %29 = vector.load %arg5[%c0_18, %c1, %c0_19] : memref<1x2x128xf32, #tpu.memory_space<vmem>>, vector<1x1x128xf32>
    %30 = vector.shape_cast %29 : vector<1x1x128xf32> to vector<1x128xf32>
    %31 = vector.shape_cast %25 : vector<1x128xf32> to vector<1x1x128xf32>
    tpu.vector_store %arg5[%c0_18, %c1, %c0_19], %31 {strides = array<i32>} : memref<1x2x128xf32, #tpu.memory_space<vmem>>, vector<1x1x128xf32>,
    return
  }
  func.func @transform_0(%arg0: i32) -> (i32, i32, i32) {
    %c0_i32 = arith.constant 0 : i32
    %c0_i32_0 = arith.constant 0 : i32
    %c0_i32_1 = arith.constant 0 : i32
    return %arg0, %c0_i32, %c0_i32_0 : i32, i32, i32
  }
  func.func @transform_1(%arg0: i32) -> (i32, i32, i32) {
    %c0_i32 = arith.constant 0 : i32
    %c0_i32_0 = arith.constant 0 : i32
    %c0_i32_1 = arith.constant 0 : i32
    return %arg0, %c0_i32, %c0_i32_0 : i32, i32, i32
  }
  func.func @transform_2(%arg0: i32) -> (i32, i32) {
    %c0_i32 = arith.constant 0 : i32
    %c0_i32_0 = arith.constant 0 : i32
    %c0_i32_1 = arith.constant 0 : i32
    return %c0_i32, %c0_i32_0 : i32, i32
  }
  func.func @transform_3(%arg0: i32) -> (i32, i32, i32) {
    %c0_i32 = arith.constant 0 : i32
    %c0_i32_0 = arith.constant 0 : i32
    %c0_i32_1 = arith.constant 0 : i32
    return %arg0, %c0_i32, %c0_i32_0 : i32, i32, i32
  }
  func.func @transform_4(%arg0: i32) -> (i32, i32, i32) {
    %c0_i32 = arith.constant 0 : i32
    %c0_i32_0 = arith.constant 0 : i32
    %c0_i32_1 = arith.constant 0 : i32
    return %arg0, %c0_i32, %c0_i32_0 : i32, i32, i32
  }
}

module attributes {stable_mosaic.version = 11 : i64} {
  func.func @_bn_apply_kernel(%arg0: i32, %arg1: memref<2x128xf32, #tpu.memory_space<vmem>>, %arg2: memref<1x16x128xf32, #tpu.memory_space<vmem>>, %arg3: memref<1x16x128xf32, #tpu.memory_space<vmem>>) attributes {dimension_semantics = [#tpu.dimension_semantics<parallel>], iteration_bounds = array<i64: 2>, scalar_prefetch = 0 : i64, scratch_operands = 0 : i64, tpu.core_type = #tpu.core_type<tc>, window_params = [{pipeline_mode = #tpu.pipeline_mode<synchronous>, transform_indices = @transform_0, window_bounds = array<i64: 2, 128>}, {transform_indices = @transform_1, window_bounds = array<i64: 1, 16, 128>}, {transform_indices = @transform_2, window_bounds = array<i64: 1, 16, 128>}]} {
    %c0 = arith.constant 0 : index
    %c0_0 = arith.constant 0 : index
    %c0_1 = arith.constant 0 : index
    %0 = vector.load %arg2[%c0, %c0_0, %c0_1] : memref<1x16x128xf32, #tpu.memory_space<vmem>>, vector<1x16x128xf32>
    %c0_2 = arith.constant 0 : index
    %c0_3 = arith.constant 0 : index
    %1 = vector.load %arg1[%c0_2, %c0_3] : memref<2x128xf32, #tpu.memory_space<vmem>>, vector<1x128xf32>
    %2 = vector.shape_cast %1 : vector<1x128xf32> to vector<1x1x128xf32>
    %3 = vector.broadcast %2 : vector<1x1x128xf32> to vector<1x16x128xf32>
    %4 = arith.mulf %0, %3 : vector<1x16x128xf32>
    %c1 = arith.constant 1 : index
    %c0_4 = arith.constant 0 : index
    %5 = vector.load %arg1[%c1, %c0_4] : memref<2x128xf32, #tpu.memory_space<vmem>>, vector<1x128xf32>
    %6 = vector.shape_cast %5 : vector<1x128xf32> to vector<1x1x128xf32>
    %7 = vector.broadcast %6 : vector<1x1x128xf32> to vector<1x16x128xf32>
    %8 = arith.addf %4, %7 : vector<1x16x128xf32>
    %c0_5 = arith.constant 0 : index
    %c0_6 = arith.constant 0 : index
    %c0_7 = arith.constant 0 : index
    %9 = vector.load %arg3[%c0_5, %c0_6, %c0_7] : memref<1x16x128xf32, #tpu.memory_space<vmem>>, vector<1x16x128xf32>
    tpu.vector_store %arg3[%c0_5, %c0_6, %c0_7], %8 {strides = array<i32>} : memref<1x16x128xf32, #tpu.memory_space<vmem>>, vector<1x16x128xf32>,
    return
  }
  func.func @transform_0(%arg0: i32) -> (i32, i32) {
    %c0_i32 = arith.constant 0 : i32
    %c0_i32_0 = arith.constant 0 : i32
    %c0_i32_1 = arith.constant 0 : i32
    return %c0_i32, %c0_i32_0 : i32, i32
  }
  func.func @transform_1(%arg0: i32) -> (i32, i32, i32) {
    %c0_i32 = arith.constant 0 : i32
    %c0_i32_0 = arith.constant 0 : i32
    %c0_i32_1 = arith.constant 0 : i32
    return %arg0, %c0_i32, %c0_i32_0 : i32, i32, i32
  }
  func.func @transform_2(%arg0: i32) -> (i32, i32, i32) {
    %c0_i32 = arith.constant 0 : i32
    %c0_i32_0 = arith.constant 0 : i32
    %c0_i32_1 = arith.constant 0 : i32
    return %arg0, %c0_i32, %c0_i32_0 : i32, i32, i32
  }
}

</mosaic_0001>

<bundles_post_ra>
// kernel: gconv_forward.3
= control target key start
LH: loop header
LB: loop body
LE: loop exit
PB: predicated region body
PF: predicated region fallthrough
CT: control target
= control target key end

     0   :  { %s244_s9 = smov 0   ;;  %s275_s0 = inlined_call_operand.vmem [shape: f32[2,128], index: 0, kind: input, shape index: {}]   ;;  %s276_s1 = inlined_call_operand.vmem [shape: f32[2,16,128], index: 1, kind: input, shape index: {}, may-alias: {1,2}]   ;;  %s277_s2 = inlined_call_operand.vmem [shape: f32[2,16,128], index: 2, kind: output, shape index: {}, may-alias: {1,2}]  }
   0x1 LB: > { %s217_s10 = sadd.s32 4294967295, %s246_s9   ;;  %p221_p0 = scmp.ge.s32.totalorder %s246_s9, 1  ;;  %s246_s9 = sphi %s244_s9, %s12_s9  }
   0x2   : > { %p112_p1 = scmp.lt.s32.totalorder %s246_s9, 3 }
   0x4   : > { %p113_p2 = pnand %p221_p0, %p112_p1 }
   0x5   : > { %p134_p3 = scmp.lt.s32.totalorder (!%p113_p2), %s217_s10, 1  ;;  %v226_v0 = vld [vmem:[%s275_s0] ss:$0 sm:$0xff] (!%p113_p2)  ;;  %v227_v3 = vld [vmem:[%s275_s0 + $0x1] ss:$0 sm:$0xff] (!%p113_p2) }
   0x6   : > { %116 = sbr.rel (%p113_p2) target bundleno = 22 (0x16), region = 28 }
   0xd   : > { %s279_s10 = smov (!%p134_p3, %s217_s10), 1 }
   0xe   : > { %s230_s11 = sshll.u32 %s279_s10, 4 }
   0xf   : > { %s138_s16 = scalar_lea.vmem %s276_s1, %s230_s11  ;;  %s143_s21 = scalar_lea.vmem %s277_s2, %s230_s11 }
  0x10   : > { %v144_v1 = vld [vmem:[%s138_s16] sm:$0xff]  ;;  %v145_v2 = vld [vmem:[%s138_s16 + $0x8] sm:$0xff] }
  0x11   : > { %v151_v4 = vmul.f32 %v226_v0, %v144_v1  ;;  %v152_v5 = vmul.f32 %v226_v0, %v145_v2 }
  0x13   : > { %v158_v6 = vadd.f32 %v227_v3, %v151_v4  ;;  %v159_v7 = vadd.f32 %v227_v3, %v152_v5 }
  0x15   : > { %160 = vst [vmem:[%s143_s21] sm:$0xff] %v158_v6  ;;  %161 = vst [vmem:[%s143_s21 + $0x8] sm:$0xff] %v159_v7 }
  0x16 PF: > { %s12_s9 = sadd.s32 1, %s246_s9  }
  0x17   : > { %p9_p4 = scmp.ge.s32.totalorder %s12_s9, 4  }
  0x19   :  { %11 = sbr.rel (!%p9_p4) target bundleno = 1 (0x1), region = 58 }

// kernel: gconv_forward.2
= control target key start
LH: loop header
LB: loop body
LE: loop exit
PB: predicated region body
PF: predicated region fallthrough
CT: control target
= control target key end

     0   :  { %s537_s15 = smov 0   ;;  %s568_s0 = inlined_call_operand.vmem [shape: f32[2,16,32], index: 0, kind: input, shape index: {}]   ;;  %s569_s1 = inlined_call_operand.vmem [shape: f32[2,32,128], index: 1, kind: input, shape index: {}]   ;;  %s570_s2 = inlined_call_operand.vmem [shape: f32[1,128], index: 2, kind: input, shape index: {}]   ;;  %s571_s3 = inlined_call_operand.vmem [shape: f32[2,16,128], index: 3, kind: output, shape index: {0}]   ;;  %s572_s4 = inlined_call_operand.vmem [shape: f32[2,2,128], index: 4, kind: output, shape index: {1}]  }
   0x1 LB: > { %s451_s16 = sadd.s32 4294967295, %s510_s15   ;;  %p455_p0 = scmp.ge.s32.totalorder %s510_s15, 1  ;;  %s510_s15 = sphi %s537_s15, %s15_s15  }
   0x2   : > { %p175_p1 = scmp.lt.s32.totalorder %s510_s15, 3 }
   0x4   : > { %p176_p2 = pnand %p455_p0, %p175_p1 }
   0x5   : > { %p210_p3 = scmp.lt.s32.totalorder (!%p176_p2), %s451_s16, 1  ;;  %vm245_vm0 = vcmask (!%p176_p2), 261120   ;;  %v230_v8 = vlaneseq (!%p176_p2)  ;;  %v463_v10 = vld [vmem:[%s570_s2] ss:$0 sm:$0xff] (!%p176_p2) }
   0x6   : > { %179 = sbr.rel (%p176_p2) target bundleno = 262 (0x106), region = 32 }
   0x7   : > { %v231_v9 = vand.u32 (!%p176_p2), 127, %v230_v8 }
   0x9   : > { %vm232_vm1 = vcmp.lt.s32.totalorder (!%p176_p2), %v231_v9, 16 }
   0xd   : > { %s574_s16 = smov (!%p210_p3, %s451_s16), 1 }
   0xe   : > { %s469_s17 = sshll.u32 %s574_s16, 5  ;;  %s468_s21 = sshll.u32 %s574_s16, 4 }
   0xf   : > { %s219_s20 = scalar_lea.vmem %s569_s1, %s469_s17  ;;  %s214_s24 = scalar_lea.vmem %s568_s0, %s468_s21 }
  0x10   : > { %v235_v0 = vld [vmem:[%s219_s20] sm:$0xff]  ;;  %v236_v1 = vld [vmem:[%s219_s20 + $0x8] sm:$0xff]  ;;  %v237_v2 = vld [vmem:[%s219_s20 + $0x10] sm:$0xff]  ;;  %s224_s29 = scalar_lea.vmem %s571_s3, %s468_s21  ;;  %s462_s30 = sshll.u32 %s574_s16, 1 }
  0x11   : > { %v488_v3 = vpack.c.bf16 %v236_v1, %v235_v0  ;;  %v238_v4 = vld [vmem:[%s219_s20 + $0x18] sm:$0xff]  ;;  %v233_v6 = vld [vmem:[%s214_s24] sm:$0xff]  ;;  %v234_v7 = vld [vmem:[%s214_s24 + $0x8] sm:$0xff]  ;;  %s228_s7 = scalar_lea.vmem %s572_s4, %s462_s30 }
  0x12   : > { %v492_v5 = vpack.c.bf16 %v238_v4, %v237_v2  ;;  %485 = vmatprep.mubr.msk.f32.mxu0 %vm245_vm0, %v233_v6 }
  0x13   : > { %489 = vmatprep.subr.bf16.mxu0 %v488_v3 }
  0x14   : > { %491 = vmatpush3.bf16.msra.mxu0 %v488_v3 }
  0x15   : > { %493 = vmatprep.subr.bf16.mxu0 %v492_v5 }
  0x18   : > { %495 = vmatpush3.bf16.msra.mxu0 %v492_v5 }
  0x1b   : > { %486 = vmatmul.mubr.msk.f32.vlgmr.msra.gmra.mrb[0].mxu0 %vm245_vm0, %v234_v7 }
  0xee   : > { %v487_v11 = vpop.f32.mrb[0].mxu0 }
  0xef   : > { %v324_v12 = vadd.f32 %v487_v11, %v463_v10  ;;  %v318_v13 = vpop.f32.mrb[1].mxu0 }
  0xf0   : > { %v319_v14 = vadd.f32 %v463_v10, %v318_v13 }
  0xf1   : > { %v328_v15 = vmax.f32 %v324_v12, 0.0 }
  0xf2   : > { %v327_v16 = vmax.f32 %v319_v14, 0.0 }
  0xf3   : > { %v330_v17 = vsel %vm232_vm1, %v328_v15, %v324_v12 }
  0xf4   : > { %332 = vst [vmem:[%s224_s29 + $0x8] sm:$0xff] %v330_v17  ;;  %v342_v18 = vmul.f32 %v330_v17, %v330_v17  ;;  %v329_v19 = vsel %vm232_vm1, %v327_v16, %v319_v14 }
  0xf5   : > { %331 = vst [vmem:[%s224_s29] sm:$0xff] %v329_v19  ;;  %v333_v20 = vadd.f32 %v330_v17, %v329_v19  ;;  %v341_v21 = vmul.f32 %v329_v19, %v329_v19 }
  0xf7   : > { %v334_v22 = vrot.slane %v333_v20, 4  ;;  %v343_v23 = vadd.f32 %v342_v18, %v341_v21 }
  0xf9   : > { %v335_v24 = vadd.f32 %v334_v22, %v333_v20  ;;  %v344_v25 = vrot.slane %v343_v23, 4 }
  0xfb   : > { %v336_v26 = vrot.slane %v335_v24, 2  ;;  %v345_v27 = vadd.f32 %v344_v25, %v343_v23 }
  0xfd   : > { %v337_v28 = vadd.f32 %v336_v26, %v335_v24  ;;  %v346_v29 = vrot.slane %v345_v27, 2 }
  0xff   : > { %v338_v30 = vrot.slane %v337_v28, 1  ;;  %v347_v31 = vadd.f32 %v346_v29, %v345_v27 }
 0x101   : > { %v339_v32 = vadd.f32 %v338_v30, %v337_v28  ;;  %v348_v33 = vrot.slane %v347_v31, 1 }
 0x103   : > { %v349_v34 = vadd.f32 %v348_v33, %v347_v31  ;;  %351 = vst [vmem:[%s228_s7] sm:$0x1] %v339_v32 }
 0x105   : > { %352 = vst [vmem:[%s228_s7 + $0x1] sm:$0x1] %v349_v34 }
 0x106 PF: > { %s15_s15 = sadd.s32 1, %s510_s15  }
 0x107   : > { %p12_p4 = scmp.ge.s32.totalorder %s15_s15, 4  }
 0x109   :  { %14 = sbr.rel (!%p12_p4) target bundleno = 1 (0x1), region = 77 }

</bundles_post_ra>
